<compile_context>
chip_gen: v7x
topology: tpu7x:2x2x1
jax: 0.10.0
libtpu: 0.0.40
codegen_flags: <defaults>
</compile_context>

<pallas_src>
import functools

import jax
import jax.numpy as jnp
from jax import lax
from jax.experimental import pallas as pl
from jax.experimental.pallas import tpu as pltpu


def _round_up(x, m):
    return (x + m - 1) // m * m


def _pick_tile(dim, max_tile, unit):
    """Largest multiple of `unit` that is <= max_tile and (preferably) divides
    `dim` exactly (so the wrapper-side pad is a no-op).  Falls back to the
    clamped max tile when no aligned divisor exists."""
    max_tile = max(unit, min(max_tile, _round_up(dim, unit)))
    for t in range(max_tile, 0, -unit):
        if dim % t == 0:
            return t
    return max_tile


def _fused_linear_ce_kernel(x_ref, w_ref, b_ref, lbl_ref, out_ref, acc_ref,
                            *, num_classes, tk, w_resident):
    """One (batch-tile, k-tile) grid step.

    x_ref   : [TB, TK]            f32   flattened examples tile (cast in-kernel)
    w_ref   : [Cpad, Dpad|TK]     bf16  classifier weight (resident or K-tiled)
    b_ref   : [Cpad, 1]           f32   classifier bias (class-padded with 0)
    lbl_ref : [1, TB]             i32   labels (-1 marks padded batch rows)
    out_ref : [1, TB]             f32   per-example CE loss (lane-dense)
    acc_ref : [Cpad, TB]          f32   partial-logit accumulator (VMEM scratch)
    """
    k = pl.program_id(1)

    @pl.when(k == 0)
    def _():
        acc_ref[...] = jnp.zeros_like(acc_ref)

    # VPU cast of the streamed f32 tile; MXU path stays bf16 x bf16 -> f32.
    x_bf16 = x_ref[...].astype(jnp.bfloat16)                       # [TB, TK]
    if w_resident:
        w_tile = w_ref[:, pl.ds(pl.multiple_of(k * tk, 128), tk)]  # [Cpad, TK]
    else:
        w_tile = w_ref[...]                                        # [Cpad, TK]

    # acc[Cpad, TB] += W[Cpad, TK] @ x[TB, TK]^T   (batch on the lane axis).
    acc_ref[...] += lax.dot_general(
        w_tile, x_bf16,
        dimension_numbers=(((1,), (1,)), ((), ())),
        preferred_element_type=jnp.float32)

    @pl.when(k == pl.num_programs(1) - 1)
    def _():
        logits = acc_ref[...] + b_ref[...]                         # [Cpad, TB]
        class_ids = lax.broadcasted_iota(jnp.int32, logits.shape, 0)
        class_valid = class_ids < num_classes
        # Finite sentinel (not -inf) so padded class lanes vanish in the
        # log-sum-exp without creating inf-inf NaN paths.
        masked = jnp.where(class_valid, logits, jnp.float32(-1e30))
        m = jnp.max(masked, axis=0, keepdims=True)                 # [1, TB]
        lse = m + jnp.log(jnp.sum(jnp.exp(masked - m),
                                  axis=0, keepdims=True))          # [1, TB]

        labels = lbl_ref[...]                                      # [1, TB]
        onehot = class_ids == labels       # padded lanes / rows never match
        picked = jnp.sum(jnp.where(onehot, logits, 0.0),
                         axis=0, keepdims=True)                    # [1, TB]

        row_valid = labels >= 0                                    # [1, TB]
        out_ref[...] = jnp.where(row_valid, lse - picked, 0.0)


@functools.partial(jax.jit, static_argnames=("num_classes", "tb", "tk"))
def loss_and_model_wrapper(examples, labels, weight, bias, *, num_classes,
                           tb=256, tk=2048):
    """examples: [B, C, H, W] f32 (NCHW), labels: [B] int32,
    weight: [num_classes, D] f32, bias: [num_classes] f32.
    Returns scalar f32 loss = CE_mean(Linear(flatten(examples)), labels)."""
    B = examples.shape[0]
    D = examples.shape[1] * examples.shape[2] * examples.shape[3]
    c_pad = _round_up(num_classes, 128)

    # --- tile selection ------------------------------------------------------
    tk = _pick_tile(D, tk, 128)
    if B >= 256:
        # Multi-tile batch: tb multiple of 128 (lane-dense loss/label blocks),
        # and at least 2 tiles so the "parallel" axis feeds both v7x cores.
        tb = _pick_tile(B, tb, 128)
        if _round_up(B, tb) // tb < 2:
            tb = _pick_tile(B, max(128, _round_up((B + 1) // 2, 128)), 128)
    else:
        # Small batch: one full tile (no batch padding pass, blocks == full dim).
        tb = _round_up(B, 8)
    b_pad = _round_up(B, tb)
    d_pad = _round_up(D, tk)
    num_bt = b_pad // tb
    num_kt = d_pad // tk

    # --- operand plumbing (pads are skipped for aligned shapes) --------------
    x = examples.reshape(B, D)                       # f32 stream; free bitcast
    if (b_pad, d_pad) != (B, D):
        x = jnp.pad(x, ((0, b_pad - B), (0, d_pad - D)))

    w = weight.astype(jnp.bfloat16)                  # [C, D] -- no transpose
    if (c_pad, d_pad) != (num_classes, D):
        w = jnp.pad(w, ((0, c_pad - num_classes), (0, d_pad - D)))

    b2 = bias.astype(jnp.float32).reshape(num_classes, 1)
    if c_pad != num_classes:
        b2 = jnp.pad(b2, ((0, c_pad - num_classes), (0, 0)))

    lbl = labels.astype(jnp.int32)
    if b_pad != B:
        lbl = jnp.pad(lbl, (0, b_pad - B), constant_values=-1)
    lbl = lbl.reshape(1, b_pad)                      # lane-dense label layout

    # --- W residency: whole W in VMEM when it fits a budget safe for v7x's
    #     64 MiB physical VMEM (could be raised on v5e/v6e: 128 MiB). ---------
    w_bytes = c_pad * d_pad * 2
    w_resident = w_bytes <= 24 * 1024 * 1024
    if w_resident:
        w_spec = pl.BlockSpec((c_pad, d_pad), lambda b, k: (0, 0))
    else:
        w_spec = pl.BlockSpec((c_pad, tk), lambda b, k: (0, k))

    # --- VMEM budget (double-buffered inputs + resident pieces + scratch) ----
    x_tile_bytes = tb * tk * 4
    acc_bytes = c_pad * tb * 4
    w_vmem = w_bytes if w_resident else 2 * c_pad * tk * 2
    small = 2 * (c_pad * 4 + tb * 4 + tb * 4)        # bias + labels + out blocks
    vmem_est = 2 * x_tile_bytes + w_vmem + acc_bytes + small
    vmem_limit = int(min(64 * 1024 * 1024,
                         max(32 * 1024 * 1024, vmem_est + 8 * 1024 * 1024)))

    kernel = functools.partial(_fused_linear_ce_kernel,
                               num_classes=num_classes, tk=tk,
                               w_resident=w_resident)

    per_example = pl.pallas_call(
        kernel,
        out_shape=jax.ShapeDtypeStruct((1, b_pad), jnp.float32),
        grid=(num_bt, num_kt),
        in_specs=[
            pl.BlockSpec((tb, tk), lambda b, k: (b, k)),       # x (f32 stream)
            w_spec,                                            # W (bf16)
            pl.BlockSpec((c_pad, 1), lambda b, k: (0, 0)),     # bias (resident)
            pl.BlockSpec((1, tb), lambda b, k: (0, b)),        # labels
        ],
        out_specs=pl.BlockSpec((1, tb), lambda b, k: (0, b)),  # lane-dense loss
        scratch_shapes=[pltpu.VMEM((c_pad, tb), jnp.float32)],
        compiler_params=pltpu.CompilerParams(
            dimension_semantics=("parallel", "arbitrary"),
            vmem_limit_bytes=vmem_limit),
        cost_estimate=pl.CostEstimate(
            flops=2 * b_pad * d_pad * c_pad,
            transcendentals=b_pad * c_pad,
            bytes_accessed=(b_pad * d_pad * 4                      # x (f32)
                            + (1 if w_resident else num_bt) * w_bytes
                            + c_pad * 4 + b_pad * 4 + b_pad * 4)),
    )(x, w, b2, lbl)

    # Padded rows contribute exactly 0; divide by the TRUE batch size.
    return jnp.sum(per_example) / jnp.float32(B)


def _reference(examples, labels, weight, bias):
    """Pure-JAX reference with operands rounded to bf16 (matches the kernel's
    bf16-input / f32-accumulate MXU path)."""
    B = examples.shape[0]
    x = examples.reshape(B, -1).astype(jnp.bfloat16).astype(jnp.float32)
    w = weight.astype(jnp.bfloat16).astype(jnp.float32)
    logits = x @ w.T + bias.astype(jnp.float32)
    logp = jax.nn.log_softmax(logits, axis=-1)
    return -jnp.mean(logp[jnp.arange(B), labels])


if __name__ == "__main__":
    # Small deterministic shapes: batch=2, channels=4, spatial=16x16, 10 classes.
    B, C, H, W = 2, 4, 16, 16
    NUM_CLASSES = 10
    D = C * H * W

    key = jax.random.PRNGKey(0)
    k_x, k_w, k_b, k_l = jax.random.split(key, 4)

    examples = jax.random.normal(k_x, (B, C, H, W), dtype=jnp.float32)
    # Deterministic synthetic "classifier" parameters (not a checkpoint).
    weight = jax.random.normal(k_w, (NUM_CLASSES, D), dtype=jnp.float32) * 0.02
    bias = jax.random.normal(k_b, (NUM_CLASSES,), dtype=jnp.float32) * 0.1
    labels = jax.random.randint(k_l, (B,), 0, NUM_CLASSES, dtype=jnp.int32)

    loss = loss_and_model_wrapper(examples, labels, weight, bias,
                                  num_classes=NUM_CLASSES)
    loss = jax.block_until_ready(loss)

    ref = _reference(examples, labels, weight, bias)
    assert jnp.allclose(loss, ref, atol=2e-3, rtol=2e-3), (loss, ref)

    print("KERNEL_OK")
</pallas_src>

<mosaic_0001>
module attributes {stable_mosaic.version = 11 : i64} {
  func.func @_fused_linear_ce_kernel(%arg0: i32, %arg1: i32, %arg2: memref<8x1024xf32, #tpu.memory_space<vmem>>, %arg3: memref<128x1024xbf16, #tpu.memory_space<vmem>>, %arg4: memref<128x1xf32, #tpu.memory_space<vmem>>, %arg5: memref<1x8xi32, #tpu.memory_space<vmem>>, %arg6: memref<1x8xf32, #tpu.memory_space<vmem>>, %arg7: memref<128x8xf32, #tpu.memory_space<vmem>>) attributes {dimension_semantics = [#tpu.dimension_semantics<parallel>, #tpu.dimension_semantics<arbitrary>], iteration_bounds = array<i64: 1, 1>, scalar_prefetch = 0 : i64, scratch_operands = 1 : i64, tpu.core_type = #tpu.core_type<tc>, window_params = [{transform_indices = @transform_0, window_bounds = array<i64: 8, 1024>}, {pipeline_mode = #tpu.pipeline_mode<synchronous>, transform_indices = @transform_1, window_bounds = array<i64: 128, 1024>}, {pipeline_mode = #tpu.pipeline_mode<synchronous>, transform_indices = @transform_2, window_bounds = array<i64: 128, 1>}, {transform_indices = @transform_3, window_bounds = array<i64: 1, 8>}, {transform_indices = @transform_4, window_bounds = array<i64: 1, 8>}]} {
    %c0_i32 = arith.constant 0 : i32
    %0 = arith.cmpi eq, %arg1, %c0_i32 : i32
    %1 = arith.extui %0 : i1 to i32
    %c0_i32_0 = arith.constant 0 : i32
    %2 = arith.cmpi ne, %1, %c0_i32_0 : i32
    scf.if %2 {
      %cst_9 = arith.constant 0.000000e+00 : f32
      %16 = vector.broadcast %cst_9 : f32 to vector<128x8xf32>
      %c0_10 = arith.constant 0 : index
      %c0_11 = arith.constant 0 : index
      %17 = vector.load %arg7[%c0_10, %c0_11] : memref<128x8xf32, #tpu.memory_space<vmem>>, vector<128x8xf32>
      tpu.vector_store %arg7[%c0_10, %c0_11], %16 {strides = array<i32>} : memref<128x8xf32, #tpu.memory_space<vmem>>, vector<128x8xf32>,
    } else {
    }
    %c0 = arith.constant 0 : index
    %c0_1 = arith.constant 0 : index
    %3 = vector.load %arg2[%c0, %c0_1] : memref<8x1024xf32, #tpu.memory_space<vmem>>, vector<8x1024xf32>
    %4 = arith.truncf %3 : vector<8x1024xf32> to vector<8x1024xbf16>
    %c1024_i32 = arith.constant 1024 : i32
    %5 = arith.muli %arg1, %c1024_i32 : i32
    %6 = tpu.assume_multiple %5, 128 : i32
    %c0_2 = arith.constant 0 : index
    %7 = arith.index_cast %6 : i32 to index
    %8 = vector.load %arg3[%c0_2, %7] : memref<128x1024xbf16, #tpu.memory_space<vmem>>, vector<128x1024xbf16>
    %c0_3 = arith.constant 0 : index
    %c0_4 = arith.constant 0 : index
    %9 = vector.load %arg7[%c0_3, %c0_4] : memref<128x8xf32, #tpu.memory_space<vmem>>, vector<128x8xf32>
    %cst = arith.constant dense<0.000000e+00> : vector<128x8xf32>
    %10 = tpu.matmul %8, %4, %cst {dimension_numbers = #tpu.dot_dimension_numbers<[1], [1], [0], [0], [0, 0, 1, 0], [], []>} : vector<128x1024xbf16>, vector<8x1024xbf16>, vector<128x8xf32> -> vector<128x8xf32>
    %11 = arith.addf %9, %10 : vector<128x8xf32>
    %c0_5 = arith.constant 0 : index
    %c0_6 = arith.constant 0 : index
    %12 = vector.load %arg7[%c0_5, %c0_6] : memref<128x8xf32, #tpu.memory_space<vmem>>, vector<128x8xf32>
    tpu.vector_store %arg7[%c0_5, %c0_6], %11 {strides = array<i32>} : memref<128x8xf32, #tpu.memory_space<vmem>>, vector<128x8xf32>,
    %c0_i32_7 = arith.constant 0 : i32
    %13 = arith.cmpi eq, %arg1, %c0_i32_7 : i32
    %14 = arith.extui %13 : i1 to i32
    %c0_i32_8 = arith.constant 0 : i32
    %15 = arith.cmpi ne, %14, %c0_i32_8 : i32
    scf.if %15 {
      %c0_9 = arith.constant 0 : index
      %c0_10 = arith.constant 0 : index
      %16 = vector.load %arg7[%c0_9, %c0_10] : memref<128x8xf32, #tpu.memory_space<vmem>>, vector<128x8xf32>
      %c0_11 = arith.constant 0 : index
      %c0_12 = arith.constant 0 : index
      %17 = vector.load %arg4[%c0_11, %c0_12] : memref<128x1xf32, #tpu.memory_space<vmem>>, vector<128x1xf32>
      %18 = vector.broadcast %17 : vector<128x1xf32> to vector<128x8xf32>
      %19 = arith.addf %16, %18 : vector<128x8xf32>
      %20 = tpu.iota {dimensions = array<i32: 0>} : vector<128x8xi32>
      %c10_i32 = arith.constant 10 : i32
      %21 = vector.broadcast %c10_i32 : i32 to vector<128x8xi32>
      %22 = arith.cmpi slt, %20, %21 : vector<128x8xi32>
      %cst_13 = arith.constant -1.000000e+30 : f32
      %23 = vector.broadcast %cst_13 : f32 to vector<128x8xf32>
      %24 = arith.select %22, %19, %23 : vector<128x8xi1>, vector<128x8xf32>
      %cst_14 = arith.constant dense<0xFF800000> : vector<8xf32>
      %25 = vector.multi_reduction <maximumf>, %24, %cst_14 [0] : vector<128x8xf32> to vector<8xf32>
      %26 = vector.shape_cast %25 : vector<8xf32> to vector<1x8xf32>
      %27 = vector.broadcast %26 : vector<1x8xf32> to vector<128x8xf32>
      %28 = arith.subf %24, %27 : vector<128x8xf32>
      %29 = math.exp %28 : vector<128x8xf32>
      %cst_15 = arith.constant dense<0.000000e+00> : vector<8xf32>
      %30 = vector.multi_reduction <add>, %29, %cst_15 [0] : vector<128x8xf32> to vector<8xf32>
      %31 = vector.shape_cast %30 : vector<8xf32> to vector<1x8xf32>
      %32 = math.log %31 : vector<1x8xf32>
      %33 = arith.addf %26, %32 : vector<1x8xf32>
      %c0_16 = arith.constant 0 : index
      %c0_17 = arith.constant 0 : index
      %34 = vector.load %arg5[%c0_16, %c0_17] : memref<1x8xi32, #tpu.memory_space<vmem>>, vector<1x8xi32>
      %35 = vector.broadcast %34 : vector<1x8xi32> to vector<128x8xi32>
      %36 = arith.cmpi eq, %20, %35 : vector<128x8xi32>
      %cst_18 = arith.constant 0.000000e+00 : f32
      %37 = vector.broadcast %cst_18 : f32 to vector<128x8xf32>
      %38 = arith.select %36, %19, %37 : vector<128x8xi1>, vector<128x8xf32>
      %cst_19 = arith.constant dense<0.000000e+00> : vector<8xf32>
      %39 = vector.multi_reduction <add>, %38, %cst_19 [0] : vector<128x8xf32> to vector<8xf32>
      %40 = vector.shape_cast %39 : vector<8xf32> to vector<1x8xf32>
      %c0_i32_20 = arith.constant 0 : i32
      %41 = vector.broadcast %c0_i32_20 : i32 to vector<1x8xi32>
      %42 = arith.cmpi sge, %34, %41 : vector<1x8xi32>
      %43 = arith.subf %33, %40 : vector<1x8xf32>
      %cst_21 = arith.constant 0.000000e+00 : f32
      %44 = vector.broadcast %cst_21 : f32 to vector<1x8xf32>
      %45 = arith.select %42, %43, %44 : vector<1x8xi1>, vector<1x8xf32>
      %c0_22 = arith.constant 0 : index
      %c0_23 = arith.constant 0 : index
      %46 = vector.load %arg6[%c0_22, %c0_23] : memref<1x8xf32, #tpu.memory_space<vmem>>, vector<1x8xf32>
      tpu.vector_store %arg6[%c0_22, %c0_23], %45 {strides = array<i32>} : memref<1x8xf32, #tpu.memory_space<vmem>>, vector<1x8xf32>,
    } else {
    }
    return
  }
  func.func @transform_0(%arg0: i32, %arg1: i32) -> (i32, i32) {
    %c0_i32 = arith.constant 0 : i32
    return %arg0, %arg1 : i32, i32
  }
  func.func @transform_1(%arg0: i32, %arg1: i32) -> (i32, i32) {
    %c0_i32 = arith.constant 0 : i32
    %c0_i32_0 = arith.constant 0 : i32
    %c0_i32_1 = arith.constant 0 : i32
    return %c0_i32, %c0_i32_0 : i32, i32
  }
  func.func @transform_2(%arg0: i32, %arg1: i32) -> (i32, i32) {
    %c0_i32 = arith.constant 0 : i32
    %c0_i32_0 = arith.constant 0 : i32
    %c0_i32_1 = arith.constant 0 : i32
    return %c0_i32, %c0_i32_0 : i32, i32
  }
  func.func @transform_3(%arg0: i32, %arg1: i32) -> (i32, i32) {
    %c0_i32 = arith.constant 0 : i32
    %c0_i32_0 = arith.constant 0 : i32
    return %c0_i32, %arg0 : i32, i32
  }
  func.func @transform_4(%arg0: i32, %arg1: i32) -> (i32, i32) {
    %c0_i32 = arith.constant 0 : i32
    %c0_i32_0 = arith.constant 0 : i32
    return %c0_i32, %arg0 : i32, i32
  }
}

</mosaic_0001>

<bundles_post_ra>
// kernel: loss_and_model_wrapper.1
= control target key start
LH: loop header
LB: loop body
LE: loop exit
PB: predicated region body
PF: predicated region fallthrough
CT: control target
= control target key end

     0   :  { %v1348_v26 = vmov 0   ;;  %vm22_vm0 = vcmask 64512   ;;  %s1837_s0 = inlined_call_operand.vmem [shape: f32[8,1024], index: 0, kind: input, shape index: {}]   ;;  %s1838_s1 = inlined_call_operand.vmem [shape: bf16[128,1024], index: 1, kind: input, shape index: {}]   ;;  %s1839_s2 = inlined_call_operand.vmem [shape: f32[128,1], index: 2, kind: input, shape index: {}]   ;;  %s1840_s3 = inlined_call_operand.vmem [shape: s32[1,8], index: 3, kind: input, shape index: {}]   ;;  %s1841_s4 = inlined_call_operand.vmem [shape: f32[1,8], index: 4, kind: output, shape index: {}]  }
   0x1   :  { %v40_v0 = vld [vmem:[%s1837_s0 + $0x8] sm:$0xff]  ;;  %v42_v1 = vld [vmem:[%s1837_s0 + $0x18] sm:$0xff]  ;;  %v39_v2 = vld [vmem:[%s1837_s0] sm:$0xff]  ;;  %1338 = vset.pattern.permute.xlu0 %v1348_v26  ;;  %1339 = vset.pattern.permute.xlu1 %v1348_v26 }
   0x2   :  { %v48_v3 = vpack.c.bf16 %v40_v0, %v40_v0  ;;  %v50_v4 = vpack.c.bf16 %v42_v1, %v42_v1  ;;  %v47_v5 = vpack.c.bf16 %v39_v2, %v39_v2  ;;  %v41_v6 = vld [vmem:[%s1837_s0 + $0x10] sm:$0xff]  ;;  %v60_v7 = vld [vmem:[%s1838_s1] sm:$0xff]  ;;  %v61_v11 = vld [vmem:[%s1838_s1 + $0x8] sm:$0xff] }
   0x3   :  { %v64_v8 = vld [vmem:[%s1838_s1 + $0x20] sm:$0xff]  ;;  %v49_v9 = vpack.c.bf16 %v41_v6, %v41_v6  ;;  %v65_v12 = vld [vmem:[%s1838_s1 + $0x28] sm:$0xff]  ;;  %v46_v16 = vld [vmem:[%s1837_s0 + $0x38] sm:$0xff] }
   0x4   :  { %v1272_v10 = vcombine.high %v60_v7, %v64_v8  ;;  %v44_v13 = vld [vmem:[%s1837_s0 + $0x28] sm:$0xff]  ;;  %460 = vmatprep.subr.bf16.mxu0 %v48_v3  ;;  %557 = vmatprep.subr.bf16.mxu1 %v50_v4  ;;  %v1274_v14 = vcombine.high %v61_v11, %v65_v12  ;;  %v54_v17 = vpack.c.bf16 %v46_v16, %v46_v16  ;;  %v43_v18 = vld [vmem:[%s1837_s0 + $0x20] sm:$0xff]  ;;  %v45_v19 = vld [vmem:[%s1837_s0 + $0x30] sm:$0xff] }
   0x5   :  { %v52_v15 = vpack.c.bf16 %v44_v13, %v44_v13  ;;  %461 = vmatpush1.bf16.xpose.msra.mxu0 %v47_v5  ;;  %558 = vmatpush1.bf16.xpose.msra.mxu1 %v49_v9  ;;  %v68_v20 = vld [vmem:[%s1838_s1 + $0x40] sm:$0xff]  ;;  %v69_v22 = vld [vmem:[%s1838_s1 + $0x48] sm:$0xff]  ;;  %v1271_v24 = vcombine.low %v60_v7, %v64_v8  ;;  %v1273_v25 = vcombine.low %v61_v11, %v65_v12  ;;  %v902_v49 = vld [vmem:[%s1839_s2 + $0x10] sm:$0xff] }
   0x6   :  { %492 = vmatprep.mubr.bf16.mxu0 %v1272_v10  ;;  %589 = vmatprep.mubr.bf16.mxu1 %v1274_v14  ;;  %v72_v21 = vld [vmem:[%s1838_s1 + $0x60] sm:$0xff]  ;;  %v73_v23 = vld [vmem:[%s1838_s1 + $0x68] sm:$0xff]  ;;  %v51_v27 = vpack.c.bf16 %v43_v18, %v43_v18  ;;  %v53_v28 = vpack.c.bf16 %v45_v19, %v45_v19  ;;  %v903_v55 = vld [vmem:[%s1839_s2 + $0x18] sm:$0xff] }
   0x7   :  { %654 = vmatprep.subr.bf16.mxu0 %v52_v15  ;;  %751 = vmatprep.subr.bf16.mxu1 %v54_v17  ;;  %v1280_v29 = vcombine.high %v68_v20, %v72_v21  ;;  %v1282_v30 = vcombine.high %v69_v22, %v73_v23  ;;  %v76_v31 = vld [vmem:[%s1838_s1 + $0x80] sm:$0xff]  ;;  %v77_v33 = vld [vmem:[%s1838_s1 + $0x88] sm:$0xff]  ;;  %v1279_v35 = vcombine.low %v68_v20, %v72_v21  ;;  %v906_v60 = vld [vmem:[%s1839_s2 + $0x30] sm:$0xff] }
   0x8   :  { %v80_v32 = vld [vmem:[%s1838_s1 + $0xa0] sm:$0xff]  ;;  %v81_v34 = vld [vmem:[%s1838_s1 + $0xa8] sm:$0xff]  ;;  %v1281_v36 = vcombine.low %v69_v22, %v73_v23  ;;  %928 = vperm.xlu1 %1339, %v902_v49   ;;  %v907_v3 = vld [vmem:[%s1839_s2 + $0x38] sm:$0xff] }
   0x9   :  { %v1288_v37 = vcombine.high %v76_v31, %v80_v32  ;;  %v1290_v38 = vcombine.high %v77_v33, %v81_v34  ;;  %v84_v39 = vld [vmem:[%s1838_s1 + $0xc0] sm:$0xff]  ;;  %v85_v41 = vld [vmem:[%s1838_s1 + $0xc8] sm:$0xff]  ;;  %v1287_v43 = vcombine.low %v76_v31, %v80_v32  ;;  %v1289_v44 = vcombine.low %v77_v33, %v81_v34  ;;  %v910_v8 = vld [vmem:[%s1839_s2 + $0x50] sm:$0xff] }
   0xa   :  { %v88_v40 = vld [vmem:[%s1838_s1 + $0xe0] sm:$0xff]  ;;  %v89_v42 = vld [vmem:[%s1838_s1 + $0xe8] sm:$0xff]  ;;  %v911_v15 = vld [vmem:[%s1839_s2 + $0x58] sm:$0xff] }
   0xb   :  { %v1296_v45 = vcombine.high %v84_v39, %v88_v40  ;;  %v1298_v46 = vcombine.high %v85_v41, %v89_v42  ;;  %v901_v47 = vld [vmem:[%s1839_s2 + $0x8] sm:$0xff]  ;;  %v900_v48 = vld [vmem:[%s1839_s2] sm:$0xff]  ;;  %v1295_v56 = vcombine.low %v84_v39, %v88_v40  ;;  %v1297_v57 = vcombine.low %v85_v41, %v89_v42  ;;  %v914_v20 = vld [vmem:[%s1839_s2 + $0x70] sm:$0xff] }
   0xc   :  { %493 = vmatmul.mubr.bf16.vlgmr.msra.gmra.mrb[0].mxu0 %v1271_v24  ;;  %590 = vmatmul.mubr.bf16.vlgmr.msra.gmra.mrb[0].mxu1 %v1273_v25  ;;  %v92_v50 = vld [vmem:[%s1838_s1 + $0x100] sm:$0xff]  ;;  %v93_v52 = vld [vmem:[%s1838_s1 + $0x108] sm:$0xff]  ;;  %v63_v31 = vld [vmem:[%s1838_s1 + $0x18] sm:$0xff] }
   0xd   :  { %655 = vmatpush1.bf16.xpose.msra.mxu0 %v51_v27  ;;  %752 = vmatpush1.bf16.xpose.msra.mxu1 %v53_v28  ;;  %v96_v51 = vld [vmem:[%s1838_s1 + $0x120] sm:$0xff]  ;;  %v97_v53 = vld [vmem:[%s1838_s1 + $0x128] sm:$0xff]  ;;  %v67_v32 = vld [vmem:[%s1838_s1 + $0x38] sm:$0xff] }
   0xe   :  { %500 = vmatprep.mubr.bf16.mxu0 %v1280_v29  ;;  %597 = vmatprep.mubr.bf16.mxu1 %v1282_v30  ;;  %v904_v54 = vld [vmem:[%s1839_s2 + $0x20] sm:$0xff]  ;;  %v1304_v58 = vcombine.high %v92_v50, %v96_v51  ;;  %v1306_v59 = vcombine.high %v93_v52, %v97_v53  ;;  %v905_v61 = vld [vmem:[%s1839_s2 + $0x28] sm:$0xff]  ;;  %v1303_v4 = vcombine.low %v92_v50, %v96_v51  ;;  %v62_v29 = vld [vmem:[%s1838_s1 + $0x10] sm:$0xff] }
   0xf   :  { %923 = vperm.xlu0 %1338, %v901_v47   ;;  %933 = vperm.xlu1 %1339, %v903_v55   ;;  %v100_v62 = vld [vmem:[%s1838_s1 + $0x140] sm:$0xff]  ;;  %v101_v0 = vld [vmem:[%s1838_s1 + $0x148] sm:$0xff]  ;;  %v1305_v5 = vcombine.low %v93_v52, %v97_v53  ;;  %v66_v30 = vld [vmem:[%s1838_s1 + $0x30] sm:$0xff]  ;;  %v1277_v42 = vcombine.low %v63_v31, %v67_v32 }
  0x10   :  { %v104_v63 = vld [vmem:[%s1838_s1 + $0x160] sm:$0xff]  ;;  %v105_v1 = vld [vmem:[%s1838_s1 + $0x168] sm:$0xff]  ;;  %v71_v39 = vld [vmem:[%s1838_s1 + $0x58] sm:$0xff]  ;;  %v1275_v41 = vcombine.low %v62_v29, %v66_v30 }
  0x11   :  { %v908_v2 = vld [vmem:[%s1839_s2 + $0x40] sm:$0xff]  ;;  %v1312_v6 = vcombine.high %v100_v62, %v104_v63  ;;  %v1314_v7 = vcombine.high %v101_v0, %v105_v1  ;;  %v909_v9 = vld [vmem:[%s1839_s2 + $0x48] sm:$0xff]  ;;  %v1311_v16 = vcombine.low %v100_v62, %v104_v63  ;;  %v1313_v17 = vcombine.low %v101_v0, %v105_v1  ;;  %v75_v40 = vld [vmem:[%s1838_s1 + $0x78] sm:$0xff] }
  0x12   :  { %v108_v10 = vld [vmem:[%s1838_s1 + $0x180] sm:$0xff]  ;;  %v109_v12 = vld [vmem:[%s1838_s1 + $0x188] sm:$0xff]  ;;  %v79_v47 = vld [vmem:[%s1838_s1 + $0x98] sm:$0xff]  ;;  %v1285_v50 = vcombine.low %v71_v39, %v75_v40 }
  0x13   :  { %918 = vperm.xlu0 %1338, %v900_v48   ;;  %943 = vperm.xlu1 %1339, %v905_v61   ;;  %v112_v11 = vld [vmem:[%s1838_s1 + $0x1a0] sm:$0xff]  ;;  %v113_v13 = vld [vmem:[%s1838_s1 + $0x1a8] sm:$0xff]  ;;  %v83_v48 = vld [vmem:[%s1838_s1 + $0xb8] sm:$0xff] }
  0x14   :  { %501 = vmatmul.mubr.bf16.gmra.mrb[4].mxu0 %v1279_v35  ;;  %598 = vmatmul.mubr.bf16.gmra.mrb[4].mxu1 %v1281_v36  ;;  %v912_v14 = vld [vmem:[%s1839_s2 + $0x60] sm:$0xff]  ;;  %v1320_v18 = vcombine.high %v108_v10, %v112_v11  ;;  %v1322_v19 = vcombine.high %v109_v12, %v113_v13  ;;  %v117_v23 = vld [vmem:[%s1838_s1 + $0x1c8] sm:$0xff]  ;;  %v1319_v25 = vcombine.low %v108_v10, %v112_v11  ;;  %v86_v53 = vld [vmem:[%s1838_s1 + $0xd0] sm:$0xff] }
  0x15   :  { %508 = vmatprep.mubr.bf16.mxu0 %v1288_v37  ;;  %605 = vmatprep.mubr.bf16.mxu1 %v1290_v38  ;;  %v116_v21 = vld [vmem:[%s1838_s1 + $0x1c0] sm:$0xff]  ;;  %v121_v24 = vld [vmem:[%s1838_s1 + $0x1e8] sm:$0xff]  ;;  %v1321_v26 = vcombine.low %v109_v12, %v113_v13  ;;  %v1276_v35 = vcombine.high %v62_v29, %v66_v30  ;;  %v1278_v36 = vcombine.high %v63_v31, %v67_v32  ;;  %v70_v37 = vld [vmem:[%s1838_s1 + $0x50] sm:$0xff] }
  0x16   :  { %v120_v22 = vld [vmem:[%s1838_s1 + $0x1e0] sm:$0xff]  ;;  %v1330_v28 = vcombine.high %v117_v23, %v121_v24  ;;  %v1329_v34 = vcombine.low %v117_v23, %v121_v24  ;;  %v74_v38 = vld [vmem:[%s1838_s1 + $0x70] sm:$0xff]  ;;  %v1294_v52 = vcombine.high %v79_v47, %v83_v48  ;;  %v87_v55 = vld [vmem:[%s1838_s1 + $0xd8] sm:$0xff] }
  0x17   :  { %938 = vperm.xlu0 %1338, %v904_v54   ;;  %953 = vperm.xlu1 %1339, %v907_v3   ;;  %v1328_v27 = vcombine.high %v116_v21, %v120_v22  ;;  %v1327_v33 = vcombine.low %v116_v21, %v120_v22  ;;  %v1283_v49 = vcombine.low %v70_v37, %v74_v38  ;;  %v90_v54 = vld [vmem:[%s1838_s1 + $0xf0] sm:$0xff]  ;;  %v95_v63 = vld [vmem:[%s1838_s1 + $0x118] sm:$0xff]  ;;  %v913_v1 = vld [vmem:[%s1839_s2 + $0x68] sm:$0xff] }
  0x18   :  { %v94_v61 = vld [vmem:[%s1838_s1 + $0x110] sm:$0xff]  ;;  %v99_v0 = vld [vmem:[%s1838_s1 + $0x138] sm:$0xff] }
  0x19   :  { %v98_v62 = vld [vmem:[%s1838_s1 + $0x130] sm:$0xff]  ;;  %v107_v10 = vld [vmem:[%s1838_s1 + $0x178] sm:$0xff]  ;;  %v1309_v12 = vcombine.low %v95_v63, %v99_v0 }
  0x1a   :  { %v1307_v11 = vcombine.low %v94_v61, %v98_v62  ;;  %v118_v23 = vld [vmem:[%s1838_s1 + $0x1d0] sm:$0xff] }
  0x1b   :  { %948 = vperm.xlu0 %1338, %v906_v60   ;;  %963 = vperm.xlu1 %1339, %v909_v9   ;;  %v103_v9 = vld [vmem:[%s1838_s1 + $0x158] sm:$0xff]  ;;  %v122_v24 = vld [vmem:[%s1838_s1 + $0x1f0] sm:$0xff] }
  0x1c   :  { %509 = vmatmul.mubr.bf16.gmra.mrb[8].mxu0 %v1287_v43  ;;  %606 = vmatmul.mubr.bf16.gmra.mrb[8].mxu1 %v1289_v44  ;;  %v1284_v43 = vcombine.high %v70_v37, %v74_v38  ;;  %v1286_v44 = vcombine.high %v71_v39, %v75_v40  ;;  %v1332_v29 = vcombine.high %v118_v23, %v122_v24 }
  0x1d   :  { %516 = vmatprep.mubr.bf16.mxu0 %v1296_v45  ;;  %613 = vmatprep.mubr.bf16.mxu1 %v1298_v46  ;;  %v78_v45 = vld [vmem:[%s1838_s1 + $0x90] sm:$0xff]  ;;  %v1331_v31 = vcombine.low %v118_v23, %v122_v24 }
  0x1e   :  { %v82_v46 = vld [vmem:[%s1838_s1 + $0xb0] sm:$0xff] }
  0x1f   :  { %958 = vperm.xlu0 %1338, %v908_v2   ;;  %973 = vperm.xlu1 %1339, %v911_v15   ;;  %v1292_v51 = vcombine.high %v78_v45, %v82_v46  ;;  %v1299_v2 = vcombine.low %v86_v53, %v90_v54  ;;  %v110_v15 = vld [vmem:[%s1838_s1 + $0x190] sm:$0xff] }
  0x23   :  { %968 = vperm.xlu0 %1338, %v910_v8   ;;  %983 = vperm.xlu1 %1339, %v913_v1   ;;  %v106_v8 = vld [vmem:[%s1838_s1 + $0x170] sm:$0xff] }
  0x24   :  { %517 = vmatmul.mubr.bf16.gmra.mrb[12].mxu0 %v1295_v56  ;;  %614 = vmatmul.mubr.bf16.gmra.mrb[12].mxu1 %v1297_v57  ;;  %v91_v56 = vld [vmem:[%s1838_s1 + $0xf8] sm:$0xff]  ;;  %v1291_v57 = vcombine.low %v78_v45, %v82_v46 }
  0x25   :  { %524 = vmatprep.mubr.bf16.mxu0 %v1304_v58  ;;  %621 = vmatprep.mubr.bf16.mxu1 %v1306_v59  ;;  %v1293_v58 = vcombine.low %v79_v47, %v83_v48  ;;  %v1300_v59 = vcombine.high %v86_v53, %v90_v54  ;;  %v1302_v60 = vcombine.high %v87_v55, %v91_v56 }
  0x26   :  { %v1301_v3 = vcombine.low %v87_v55, %v91_v56 }
  0x27   :  { %978 = vperm.xlu0 %1338, %v912_v14   ;;  %v1318_v14 = vcombine.high %v103_v9, %v107_v10 }
  0x2b   :  { %988 = vperm.xlu0 %1338, %v914_v20   ;;  %v1317_v20 = vcombine.low %v103_v9, %v107_v10 }
  0x2c   :  { %525 = vmatmul.mubr.bf16.gmra.mrb[16].mxu0 %v1303_v4  ;;  %622 = vmatmul.mubr.bf16.gmra.mrb[16].mxu1 %v1305_v5  ;;  %v1308_v4 = vcombine.high %v94_v61, %v98_v62  ;;  %v1310_v5 = vcombine.high %v95_v63, %v99_v0 }
  0x2d   :  { %532 = vmatprep.mubr.bf16.mxu0 %v1312_v6  ;;  %629 = vmatprep.mubr.bf16.mxu1 %v1314_v7  ;;  %v915_v6 = vld [vmem:[%s1839_s2 + $0x78] sm:$0xff]  ;;  %v102_v7 = vld [vmem:[%s1838_s1 + $0x150] sm:$0xff] }
  0x2e   :  { %993 = vperm.xlu1 %1339, %v915_v6   ;;  %v1316_v13 = vcombine.high %v102_v7, %v106_v8 }
  0x34   :  { %533 = vmatmul.mubr.bf16.gmra.mrb[20].mxu0 %v1311_v16  ;;  %630 = vmatmul.mubr.bf16.gmra.mrb[20].mxu1 %v1313_v17  ;;  %v114_v16 = vld [vmem:[%s1838_s1 + $0x1b0] sm:$0xff]  ;;  %v111_v17 = vld [vmem:[%s1838_s1 + $0x198] sm:$0xff] }
  0x35   :  { %540 = vmatprep.mubr.bf16.mxu0 %v1320_v18  ;;  %637 = vmatprep.mubr.bf16.mxu1 %v1322_v19  ;;  %v115_v18 = vld [vmem:[%s1838_s1 + $0x1b8] sm:$0xff]  ;;  %v1315_v19 = vcombine.low %v102_v7, %v106_v8  ;;  %v1324_v21 = vcombine.high %v110_v15, %v114_v16 }
  0x36   :  { %v1326_v22 = vcombine.high %v111_v17, %v115_v18 }
  0x3c   :  { %541 = vmatmul.mubr.bf16.gmra.mrb[24].mxu0 %v1319_v25  ;;  %638 = vmatmul.mubr.bf16.gmra.mrb[24].mxu1 %v1321_v26  ;;  %v119_v25 = vld [vmem:[%s1838_s1 + $0x1d8] sm:$0xff] }
  0x3d   :  { %548 = vmatprep.mubr.bf16.mxu0 %v1328_v27  ;;  %645 = vmatprep.mubr.bf16.mxu1 %v1330_v28  ;;  %v123_v26 = vld [vmem:[%s1838_s1 + $0x1f8] sm:$0xff]  ;;  %v1323_v27 = vcombine.low %v110_v15, %v114_v16  ;;  %v1325_v28 = vcombine.low %v111_v17, %v115_v18 }
  0x3e   :  { %v1334_v30 = vcombine.high %v119_v25, %v123_v26  ;;  %v1333_v32 = vcombine.low %v119_v25, %v123_v26 }
  0x44   :  { %549 = vmatmul.mubr.bf16.gmra.mrb[28].mxu0 %v1327_v33  ;;  %646 = vmatmul.mubr.bf16.gmra.mrb[28].mxu1 %v1329_v34  ;;  %v1349_v33 = vmov 0.0  }
  0x45   :  { %686 = vmatprep.mubr.bf16.mxu0 %v1276_v35  ;;  %783 = vmatprep.mubr.bf16.mxu1 %v1278_v36  ;;  %23 = vst.msk [vmem:[#allocation2] sm:$0xff] %vm22_vm0, %v1349_v33  ;;  %24 = vst.msk [vmem:[#allocation2 + $0x8] sm:$0xff] %vm22_vm0, %v1349_v33 }
  0x46   :  { %25 = vst.msk [vmem:[#allocation2 + $0x10] sm:$0xff] %vm22_vm0, %v1349_v33  ;;  %26 = vst.msk [vmem:[#allocation2 + $0x18] sm:$0xff] %vm22_vm0, %v1349_v33 }
  0x47   :  { %27 = vst.msk [vmem:[#allocation2 + $0x20] sm:$0xff] %vm22_vm0, %v1349_v33  ;;  %28 = vst.msk [vmem:[#allocation2 + $0x28] sm:$0xff] %vm22_vm0, %v1349_v33 }
  0x48   :  { %29 = vst.msk [vmem:[#allocation2 + $0x30] sm:$0xff] %vm22_vm0, %v1349_v33  ;;  %30 = vst.msk [vmem:[#allocation2 + $0x38] sm:$0xff] %vm22_vm0, %v1349_v33 }
  0x49   :  { %31 = vst.msk [vmem:[#allocation2 + $0x40] sm:$0xff] %vm22_vm0, %v1349_v33  ;;  %32 = vst.msk [vmem:[#allocation2 + $0x48] sm:$0xff] %vm22_vm0, %v1349_v33 }
  0x4a   :  { %33 = vst.msk [vmem:[#allocation2 + $0x50] sm:$0xff] %vm22_vm0, %v1349_v33  ;;  %34 = vst.msk [vmem:[#allocation2 + $0x58] sm:$0xff] %vm22_vm0, %v1349_v33 }
  0x4b   :  { %35 = vst.msk [vmem:[#allocation2 + $0x60] sm:$0xff] %vm22_vm0, %v1349_v33  ;;  %36 = vst.msk [vmem:[#allocation2 + $0x68] sm:$0xff] %vm22_vm0, %v1349_v33 }
  0x4c   :  { %687 = vmatmul.mubr.bf16.vlgmr.msra.gmra.mrb[32].mxu0 %v1275_v41  ;;  %784 = vmatmul.mubr.bf16.vlgmr.msra.gmra.mrb[32].mxu1 %v1277_v42  ;;  %37 = vst.msk [vmem:[#allocation2 + $0x70] sm:$0xff] %vm22_vm0, %v1349_v33  ;;  %38 = vst.msk [vmem:[#allocation2 + $0x78] sm:$0xff] %vm22_vm0, %v1349_v33 }
  0x4d   :  { %694 = vmatprep.mubr.bf16.mxu0 %v1284_v43  ;;  %791 = vmatprep.mubr.bf16.mxu1 %v1286_v44 }
  0x54   :  { %695 = vmatmul.mubr.bf16.gmra.mrb[36].mxu0 %v1283_v49  ;;  %792 = vmatmul.mubr.bf16.gmra.mrb[36].mxu1 %v1285_v50 }
  0x55   :  { %702 = vmatprep.mubr.bf16.mxu0 %v1292_v51  ;;  %799 = vmatprep.mubr.bf16.mxu1 %v1294_v52 }
  0x5c   :  { %703 = vmatmul.mubr.bf16.gmra.mrb[40].mxu0 %v1291_v57  ;;  %800 = vmatmul.mubr.bf16.gmra.mrb[40].mxu1 %v1293_v58 }
  0x5d   :  { %710 = vmatprep.mubr.bf16.mxu0 %v1300_v59  ;;  %807 = vmatprep.mubr.bf16.mxu1 %v1302_v60 }
  0x64   :  { %711 = vmatmul.mubr.bf16.gmra.mrb[44].mxu0 %v1299_v2  ;;  %808 = vmatmul.mubr.bf16.gmra.mrb[44].mxu1 %v1301_v3 }
  0x65   :  { %718 = vmatprep.mubr.bf16.mxu0 %v1308_v4  ;;  %815 = vmatprep.mubr.bf16.mxu1 %v1310_v5 }
  0x6c   :  { %719 = vmatmul.mubr.bf16.gmra.mrb[48].mxu0 %v1307_v11  ;;  %816 = vmatmul.mubr.bf16.gmra.mrb[48].mxu1 %v1309_v12 }
  0x6d   :  { %726 = vmatprep.mubr.bf16.mxu0 %v1316_v13  ;;  %823 = vmatprep.mubr.bf16.mxu1 %v1318_v14 }
  0x74   :  { %727 = vmatmul.mubr.bf16.gmra.mrb[52].mxu0 %v1315_v19  ;;  %824 = vmatmul.mubr.bf16.gmra.mrb[52].mxu1 %v1317_v20 }
  0x75   :  { %734 = vmatprep.mubr.bf16.mxu0 %v1324_v21  ;;  %831 = vmatprep.mubr.bf16.mxu1 %v1326_v22 }
  0x7c   :  { %735 = vmatmul.mubr.bf16.gmra.mrb[56].mxu0 %v1323_v27  ;;  %832 = vmatmul.mubr.bf16.gmra.mrb[56].mxu1 %v1325_v28 }
  0x7d   :  { %742 = vmatprep.mubr.bf16.mxu0 %v1332_v29  ;;  %839 = vmatprep.mubr.bf16.mxu1 %v1334_v30 }
  0x84   :  { %743 = vmatmul.mubr.bf16.gmra.mrb[60].mxu0 %v1331_v31  ;;  %840 = vmatmul.mubr.bf16.gmra.mrb[60].mxu1 %v1333_v32 }
  0xdf   :  { %v494_v34 = vpop.f32.mrb[0].mxu0  ;;  %v591_v35 = vpop.f32.mrb[0].mxu1 }
  0xe0   :  { %v1656_v36 = vadd.f32 %v591_v35, %v494_v34  ;;  %v496_v37 = vpop.f32.mrb[1].mxu0  ;;  %v593_v38 = vpop.f32.mrb[1].mxu1 }
  0xe1   :  { %v497_v39 = vpop.f32.mrb[2].mxu0  ;;  %v594_v40 = vpop.f32.mrb[2].mxu1 }
  0xe2   :  { %v1658_v41 = vadd.f32 %v594_v40, %v497_v39  ;;  %v499_v42 = vpop.f32.mrb[3].mxu0  ;;  %v596_v43 = vpop.f32.mrb[3].mxu1 }
  0xe7   :  { %v502_v44 = vpop.f32.mrb[4].mxu0  ;;  %v599_v45 = vpop.f32.mrb[4].mxu1 }
  0xe8   :  { %v1660_v46 = vadd.f32 %v599_v45, %v502_v44  ;;  %v504_v47 = vpop.f32.mrb[5].mxu0  ;;  %v601_v48 = vpop.f32.mrb[5].mxu1 }
  0xe9   :  { %v505_v49 = vpop.f32.mrb[6].mxu0  ;;  %v602_v50 = vpop.f32.mrb[6].mxu1 }
  0xea   :  { %v1662_v51 = vadd.f32 %v602_v50, %v505_v49  ;;  %v507_v52 = vpop.f32.mrb[7].mxu0  ;;  %v604_v53 = vpop.f32.mrb[7].mxu1 }
  0xef   :  { %v510_v54 = vpop.f32.mrb[8].mxu0  ;;  %v607_v55 = vpop.f32.mrb[8].mxu1 }
  0xf0   :  { %v1664_v56 = vadd.f32 %v607_v55, %v510_v54  ;;  %v512_v57 = vpop.f32.mrb[9].mxu0  ;;  %v609_v58 = vpop.f32.mrb[9].mxu1 }
  0xf1   :  { %v513_v59 = vpop.f32.mrb[10].mxu0  ;;  %v610_v60 = vpop.f32.mrb[10].mxu1 }
  0xf2   :  { %v1666_v61 = vadd.f32 %v610_v60, %v513_v59  ;;  %v515_v62 = vpop.f32.mrb[11].mxu0  ;;  %v612_v63 = vpop.f32.mrb[11].mxu1  ;;  %v124_v60 = vld [vmem:[#allocation2] sm:$0xff] }
  0xf7   :  { %v518_v0 = vpop.f32.mrb[12].mxu0  ;;  %v615_v1 = vpop.f32.mrb[12].mxu1 }
  0xf8   :  { %v1668_v2 = vadd.f32 %v615_v1, %v518_v0  ;;  %v520_v3 = vpop.f32.mrb[13].mxu0  ;;  %v617_v4 = vpop.f32.mrb[13].mxu1 }
  0xf9   :  { %v521_v5 = vpop.f32.mrb[14].mxu0  ;;  %v618_v6 = vpop.f32.mrb[14].mxu1 }
  0xfa   :  { %v1670_v7 = vadd.f32 %v618_v6, %v521_v5  ;;  %v523_v8 = vpop.f32.mrb[15].mxu0  ;;  %v620_v9 = vpop.f32.mrb[15].mxu1  ;;  %v125_v5 = vld [vmem:[#allocation2 + $0x8] sm:$0xff] }
  0xfb   :  { %v1012_v9 = vlaneseq }
  0xff   :  { %v526_v10 = vpop.f32.mrb[16].mxu0  ;;  %v623_v11 = vpop.f32.mrb[16].mxu1 }
 0x100   :  { %v1672_v12 = vadd.f32 %v623_v11, %v526_v10  ;;  %v528_v13 = vpop.f32.mrb[17].mxu0  ;;  %v625_v14 = vpop.f32.mrb[17].mxu1 }
 0x101   :  { %v529_v15 = vpop.f32.mrb[18].mxu0  ;;  %v626_v16 = vpop.f32.mrb[18].mxu1 }
 0x102   :  { %v1674_v17 = vadd.f32 %v626_v16, %v529_v15  ;;  %v531_v18 = vpop.f32.mrb[19].mxu0  ;;  %v628_v19 = vpop.f32.mrb[19].mxu1 }
 0x103   :  { %v924_v10 = vpop.permute.xlu0 %923 }
 0x107   :  { %v534_v20 = vpop.f32.mrb[20].mxu0  ;;  %v631_v21 = vpop.f32.mrb[20].mxu1 }
 0x108   :  { %v1676_v22 = vadd.f32 %v631_v21, %v534_v20  ;;  %v536_v23 = vpop.f32.mrb[21].mxu0  ;;  %v633_v24 = vpop.f32.mrb[21].mxu1  ;;  %v1693_v20 = vshrl.u32 %v1012_v9, 7 }
 0x109   :  { %v537_v25 = vpop.f32.mrb[22].mxu0  ;;  %v634_v26 = vpop.f32.mrb[22].mxu1 }
 0x10a   :  { %v1678_v27 = vadd.f32 %v634_v26, %v537_v25  ;;  %v539_v28 = vpop.f32.mrb[23].mxu0  ;;  %v636_v29 = vpop.f32.mrb[23].mxu1  ;;  %v127_v26 = vld [vmem:[#allocation2 + $0x18] sm:$0xff] }
 0x10b   :  { %v1697_v28 = vadd.s32 8, %v1693_v20 }
 0x10d   :  { %vm1030_vm1 = vcmp.lt.s32.totalorder %v1697_v28, 10 }
 0x10f   :  { %v542_v30 = vpop.f32.mrb[24].mxu0  ;;  %v639_v31 = vpop.f32.mrb[24].mxu1 }
 0x110   :  { %v1680_v32 = vadd.f32 %v639_v31, %v542_v30  ;;  %v544_v33 = vpop.f32.mrb[25].mxu0  ;;  %v641_v34 = vpop.f32.mrb[25].mxu1 }
 0x111   :  { %v545_v35 = vpop.f32.mrb[26].mxu0  ;;  %v642_v37 = vpop.f32.mrb[26].mxu1  ;;  %v1350_v34 = vmov -inf  }
 0x112   :  { %v1682_v38 = vadd.f32 %v642_v37, %v545_v35  ;;  %v547_v39 = vpop.f32.mrb[27].mxu0  ;;  %v644_v40 = vpop.f32.mrb[27].mxu1  ;;  %v1063_v35 = vsel %vm22_vm0, -1e+30, %v1350_v34 }
 0x113   :  { %v919_v31 = vpop.permute.xlu0 %918 }
 0x117   :  { %v550_v42 = vpop.f32.mrb[28].mxu0  ;;  %v647_v43 = vpop.f32.mrb[28].mxu1 }
 0x118   :  { %v1684_v44 = vadd.f32 %v647_v43, %v550_v42  ;;  %v552_v45 = vpop.f32.mrb[29].mxu0  ;;  %v649_v47 = vpop.f32.mrb[29].mxu1 }
 0x119   :  { %v553_v48 = vpop.f32.mrb[30].mxu0  ;;  %v650_v49 = vpop.f32.mrb[30].mxu1 }
 0x11a   :  { %v1686_v50 = vadd.f32 %v650_v49, %v553_v48  ;;  %v555_v52 = vpop.f32.mrb[31].mxu0  ;;  %v652_v53 = vpop.f32.mrb[31].mxu1 }
 0x11b   :  { %v128_v52 = vld [vmem:[#allocation2 + $0x20] sm:$0xff] }
 0x11f   :  { %v688_v54 = vpop.f32.mrb[32].mxu0  ;;  %v785_v55 = vpop.f32.mrb[32].mxu1 }
 0x120   :  { %v689_v57 = vadd.f32 %v688_v54, %v1656_v36  ;;  %v690_v58 = vpop.f32.mrb[33].mxu0  ;;  %v787_v59 = vpop.f32.mrb[33].mxu1 }
 0x121   :  { %v691_v62 = vpop.f32.mrb[34].mxu0  ;;  %v788_v63 = vpop.f32.mrb[34].mxu1 }
 0x122   :  { %v786_v0 = vadd.f32 %v785_v55, %v689_v57  ;;  %v692_v1 = vadd.f32 %v691_v62, %v1658_v41  ;;  %v693_v3 = vpop.f32.mrb[35].mxu0  ;;  %v790_v4 = vpop.f32.mrb[35].mxu1  ;;  %v126_v41 = vld [vmem:[#allocation2 + $0x10] sm:$0xff]  ;;  %v129_v62 = vld [vmem:[#allocation2 + $0x28] sm:$0xff] }
 0x124   :  { %v848_v6 = vadd.f32 %v786_v0, %v124_v60  ;;  %v789_v8 = vadd.f32 %v788_v63, %v692_v1 }
 0x126   :  { %865 = vst.msk [vmem:[#allocation2] sm:$0xff] %vm22_vm0, %v848_v6  ;;  %v849_v11 = vadd.f32 %v789_v8, %v125_v5 }
 0x127   :  { %v696_v13 = vpop.f32.mrb[36].mxu0  ;;  %v793_v36 = vpop.f32.mrb[36].mxu1 }
 0x128   :  { %866 = vst.msk [vmem:[#allocation2 + $0x8] sm:$0xff] %vm22_vm0, %v849_v11  ;;  %v697_v14 = vadd.f32 %v696_v13, %v1660_v46  ;;  %v698_v15 = vpop.f32.mrb[37].mxu0  ;;  %v795_v16 = vpop.f32.mrb[37].mxu1 }
 0x129   :  { %v699_v18 = vpop.f32.mrb[38].mxu0  ;;  %v796_v19 = vpop.f32.mrb[38].mxu1 }
 0x12a   :  { %v700_v21 = vadd.f32 %v699_v18, %v1662_v51  ;;  %v794_v23 = vadd.f32 %v793_v36, %v697_v14  ;;  %v701_v24 = vpop.f32.mrb[39].mxu0  ;;  %v798_v25 = vpop.f32.mrb[39].mxu1  ;;  %v130_v18 = vld [vmem:[#allocation2 + $0x30] sm:$0xff] }
 0x12c   :  { %v850_v29 = vadd.f32 %v794_v23, %v126_v41  ;;  %v797_v30 = vadd.f32 %v796_v19, %v700_v21  ;;  %v131_v23 = vld [vmem:[#allocation2 + $0x38] sm:$0xff] }
 0x12d   :  { %v884_v46 = vld [vmem:[#allocation2] sm:$0xff] }
 0x12e   :  { %867 = vst.msk [vmem:[#allocation2 + $0x10] sm:$0xff] %vm22_vm0, %v850_v29  ;;  %v851_v33 = vadd.f32 %v797_v30, %v127_v26  ;;  %v1701_v37 = vadd.f32 %v919_v31, %v884_v46  ;;  %v1189_v29 = vsub.s32 0, %v1693_v20  ;;  %v929_v30 = vpop.permute.xlu1 %928  ;;  %v1724_v46 = vld [vmem:[%s1840_s3] sm:$0x1] }
 0x12f   :  { %v704_v51 = vpop.f32.mrb[40].mxu0  ;;  %v801_v39 = vpop.f32.mrb[40].mxu1  ;;  %v885_v40 = vld [vmem:[#allocation2 + $0x8] sm:$0xff] }
 0x130   :  { %868 = vst.msk [vmem:[#allocation2 + $0x18] sm:$0xff] %vm22_vm0, %v851_v33  ;;  %v705_v42 = vadd.f32 %v704_v51, %v1664_v56  ;;  %v706_v43 = vpop.f32.mrb[41].mxu0  ;;  %v803_v45 = vpop.f32.mrb[41].mxu1  ;;  %v1706_v47 = vadd.f32 %v924_v10, %v885_v40  ;;  %v1061_v48 = vsel %vm22_vm0, %v1701_v37, -inf }
 0x131   :  { %v707_v49 = vpop.f32.mrb[42].mxu0  ;;  %v1066_v53 = vmax.f32 %v1061_v48, %v1063_v35  ;;  %v804_v54 = vpop.f32.mrb[42].mxu1  ;;  %v1730_v43 = vrot.slane %v1724_v46, %v1189_v29  ;;  %v135_v29 = vld [vmem:[#allocation2 + $0x58] sm:$0xff] }
 0x132   :  { %v708_v55 = vadd.f32 %v707_v49, %v1666_v61  ;;  %v802_v57 = vadd.f32 %v801_v39, %v705_v42  ;;  %v1712_v58 = vsel %vm1030_vm1, %v1706_v47, -1e+30  ;;  %v709_v59 = vpop.f32.mrb[43].mxu0  ;;  %v806_v60 = vpop.f32.mrb[43].mxu1  ;;  %v132_v49 = vld [vmem:[#allocation2 + $0x40] sm:$0xff] }
 0x133   :  { %v1062_v56 = vsel %vm22_vm0, %v1712_v58, -inf  ;;  %v1074_v1 = vmax.f32 %v1066_v53, %v1063_v35  ;;  %vm1192_vm2 = vcmp.eq.s32.totalorder %v1697_v28, %v1730_v43  ;;  %vm1191_vm3 = vcmp.eq.s32.totalorder %v1693_v20, %v1730_v43 }
 0x134   :  { %v852_v63 = vadd.f32 %v802_v57, %v128_v52  ;;  %v1068_v0 = vmax.f32 %v1062_v56, %v1063_v35  ;;  %v805_v3 = vadd.f32 %v804_v54, %v708_v55  ;;  %v133_v55 = vld [vmem:[#allocation2 + $0x48] sm:$0xff]  ;;  %v1015_v57 = vadd.s32 16, %v1693_v20 }
 0x135   :  { %v1082_v8 = vmax.f32 %v1074_v1, %v1063_v35 }
 0x136   :  { %869 = vst.msk [vmem:[#allocation2 + $0x20] sm:$0xff] %vm22_vm0, %v852_v63  ;;  %v1076_v4 = vmax.f32 %v1068_v0, %v1063_v35  ;;  %v853_v5 = vadd.f32 %v805_v3, %v129_v62  ;;  %v939_v62 = vpop.permute.xlu0 %938  ;;  %v1208_v3 = vsel %vm1192_vm2, %v1706_v47, 0.0  ;;  %vm1193_vm4 = vcmp.eq.s32.totalorder %v1015_v57, %v1730_v43 }
 0x137   :  { %v712_v6 = vpop.f32.mrb[44].mxu0  ;;  %v809_v61 = vpop.f32.mrb[44].mxu1  ;;  %v1207_v47 = vsel %vm1191_vm3, %v1701_v37, 0.0  ;;  %vm1263_vm3 = vcmask 57344  }
 0x138   :  { %v1084_v9 = vmax.f32 %v1076_v4, %v1063_v35  ;;  %870 = vst.msk [vmem:[#allocation2 + $0x28] sm:$0xff] %vm22_vm0, %v853_v5  ;;  %v713_v10 = vadd.f32 %v712_v6, %v1668_v2  ;;  %v714_v11 = vpop.f32.mrb[45].mxu0  ;;  %v811_v13 = vpop.f32.mrb[45].mxu1  ;;  %v1016_v6 = vadd.s32 24, %v1693_v20 }
 0x139   :  { %v715_v36 = vpop.f32.mrb[46].mxu0  ;;  %v812_v14 = vpop.f32.mrb[46].mxu1  ;;  %v1017_v11 = vadd.s32 32, %v1693_v20 }
 0x13a   :  { %v1089_v15 = vmax.f32 %v1082_v8, %v1084_v9  ;;  %v716_v16 = vadd.f32 %v715_v36, %v1670_v7  ;;  %v717_v41 = vpop.f32.mrb[47].mxu0  ;;  %v814_v19 = vpop.f32.mrb[47].mxu1  ;;  %v810_v21 = vadd.f32 %v809_v61, %v713_v10  ;;  %v887_v61 = vld [vmem:[#allocation2 + $0x18] sm:$0xff]  ;;  %v134_v36 = vld [vmem:[#allocation2 + $0x50] sm:$0xff]  ;;  %vm1194_vm5 = vcmp.eq.s32.totalorder %v1016_v6, %v1730_v43 }
 0x13b   :  { %vm1195_vm6 = vcmp.eq.s32.totalorder %v1017_v11, %v1730_v43 }
 0x13c   :  { %v1091_v24 = vmax.f32 %v1089_v15, %v1063_v35  ;;  %v813_v25 = vadd.f32 %v812_v14, %v716_v16  ;;  %v854_v26 = vadd.f32 %v810_v21, %v130_v18  ;;  %v1224_v18 = vsel %vm22_vm0, %v1208_v3, 0.0 }
 0x13d   :  { %v888_v41 = vld [vmem:[#allocation2 + $0x20] sm:$0xff] }
 0x13e   :  { %v1092_v31 = vrot.slane %v1091_v24, 4  ;;  %v855_v2 = vadd.f32 %v813_v25, %v131_v23  ;;  %871 = vst.msk [vmem:[#allocation2 + $0x30] sm:$0xff] %vm22_vm0, %v854_v26 }
 0x13f   :  { %v720_v7 = vpop.f32.mrb[48].mxu0  ;;  %v817_v33 = vpop.f32.mrb[48].mxu1 }
 0x140   :  { %v1093_v34 = vmax.f32 %v1091_v24, %v1092_v31  ;;  %872 = vst.msk [vmem:[#allocation2 + $0x38] sm:$0xff] %vm22_vm0, %v855_v2  ;;  %v721_v35 = vadd.f32 %v720_v7, %v1672_v12  ;;  %v722_v51 = vpop.f32.mrb[49].mxu0  ;;  %v819_v39 = vpop.f32.mrb[49].mxu1  ;;  %v886_v12 = vld [vmem:[#allocation2 + $0x10] sm:$0xff]  ;;  %v1000_v2 = vadd.f32 %v939_v62, %v888_v41  ;;  %v136_v62 = vld [vmem:[#allocation2 + $0x60] sm:$0xff] }
 0x141   :  { %v723_v40 = vpop.f32.mrb[50].mxu0  ;;  %v820_v42 = vpop.f32.mrb[50].mxu1  ;;  %v998_v1 = vadd.f32 %v929_v30, %v886_v12  ;;  %v889_v39 = vld [vmem:[#allocation2 + $0x28] sm:$0xff] }
 0x142   :  { %v1094_v45 = vrot.slane %v1093_v34, 2  ;;  %v724_v48 = vadd.f32 %v723_v40, %v1674_v17  ;;  %v725_v52 = vpop.f32.mrb[51].mxu0  ;;  %v822_v53 = vpop.f32.mrb[51].mxu1  ;;  %v818_v54 = vadd.f32 %v817_v33, %v721_v35  ;;  %v1223_v35 = vsel %vm22_vm0, %v1207_v47, 0.0 }
 0x143   :  { %v934_v17 = vpop.permute.xlu1 %933  ;;  %v1209_v23 = vsel %vm1193_vm4, %v998_v1, 0.0  ;;  %v1225_v40 = vadd.f32 %v1224_v18, %v1223_v35  ;;  %v1211_v12 = vsel %vm1195_vm6, %v1000_v2, 0.0  ;;  %v1020_v47 = vadd.s32 56, %v1693_v20 }
 0x144   :  { %v1095_v59 = vmax.f32 %v1093_v34, %v1094_v45  ;;  %v821_v60 = vadd.f32 %v820_v42, %v724_v48  ;;  %v856_v56 = vadd.f32 %v818_v54, %v132_v49  ;;  %v999_v24 = vadd.f32 %v934_v17, %v887_v61  ;;  %v949_v34 = vpop.permute.xlu0 %948 }
 0x145   :  { %v1226_v51 = vsel %vm22_vm0, %v1209_v23, 0.0  ;;  %vm1198_vm9 = vcmp.eq.s32.totalorder %v1020_v47, %v1730_v43 }
 0x146   :  { %v1096_v63 = vrot.slane %v1095_v59, 1  ;;  %v857_v0 = vadd.f32 %v821_v60, %v133_v55  ;;  %873 = vst.msk [vmem:[#allocation2 + $0x40] sm:$0xff] %vm22_vm0, %v856_v56  ;;  %v1210_v42 = vsel %vm1194_vm5, %v999_v24, 0.0  ;;  %v1227_v55 = vadd.f32 %v1226_v51, %v1225_v40  ;;  %v890_v60 = vld [vmem:[#allocation2 + $0x30] sm:$0xff] }
 0x147   :  { %v728_v4 = vpop.f32.mrb[52].mxu0  ;;  %v825_v5 = vpop.f32.mrb[52].mxu1  ;;  %v1228_v17 = vsel %vm22_vm0, %v1210_v42, 0.0  ;;  %v1002_v6 = vadd.f32 %v949_v34, %v890_v60 }
 0x148   :  { %v1741_v28 = vmax.f32 %v1095_v59, %v1096_v63  ;;  %874 = vst.msk [vmem:[#allocation2 + $0x48] sm:$0xff] %vm22_vm0, %v857_v0  ;;  %v729_v8 = vadd.f32 %v728_v4, %v1676_v22  ;;  %v730_v9 = vpop.f32.mrb[53].mxu0  ;;  %v827_v10 = vpop.f32.mrb[53].mxu1  ;;  %v1019_v59 = vadd.s32 48, %v1693_v20  ;;  %v137_v4 = vld [vmem:[#allocation2 + $0x68] sm:$0xff] }
 0x149   :  { %v731_v13 = vpop.f32.mrb[54].mxu0  ;;  %v828_v14 = vpop.f32.mrb[54].mxu1  ;;  %v1229_v9 = vadd.f32 %v1228_v17, %v1227_v55 }
 0x14a   :  { %v1098_v15 = vsub.f32 %v1701_v37, %v1741_v28  ;;  %v1099_v16 = vsub.f32 %v1712_v58, %v1741_v28  ;;  %v1100_v22 = vsub.f32 -1e+30, %v1741_v28  ;;  %v733_v19 = vpop.f32.mrb[55].mxu0  ;;  %v830_v21 = vpop.f32.mrb[55].mxu1  ;;  %v732_v25 = vadd.f32 %v731_v13, %v1678_v27  ;;  %v891_v13 = vld [vmem:[#allocation2 + $0x38] sm:$0xff] }
 0x14b   :  { %v826_v26 = vadd.f32 %v825_v5, %v729_v8  ;;  %v1018_v58 = vadd.s32 40, %v1693_v20  ;;  %v944_v27 = vpop.permute.xlu1 %943  ;;  %v1230_v5 = vsel %vm22_vm0, %v1211_v12, 0.0  ;;  %vm1197_vm8 = vcmp.eq.s32.totalorder %v1019_v59, %v1730_v43 }
 0x14c   :  { %v1114_v30 = vmul.f32 1.442695, %v1098_v15  ;;  %v1116_v37 = vmul.f32 1.442695, %v1099_v16  ;;  %v1118_v31 = vmul.f32 1.442695, %v1100_v22  ;;  %v829_v33 = vadd.f32 %v828_v14, %v732_v25 }
 0x14d   :  { %v858_v7 = vadd.f32 %v826_v26, %v134_v36  ;;  %v1001_v57 = vadd.f32 %v944_v27, %v889_v39  ;;  %vm1196_vm7 = vcmp.eq.s32.totalorder %v1018_v58, %v1730_v43  ;;  %v959_v36 = vpop.permute.xlu0 %958  ;;  %v1231_v14 = vadd.f32 %v1230_v5, %v1229_v9  ;;  %v892_v16 = vld [vmem:[#allocation2 + $0x40] sm:$0xff]  ;;  %v138_v58 = vld [vmem:[#allocation2 + $0x70] sm:$0xff] }
 0x14e   :  { %1340 = vpow2.f32 %v1114_v30  ;;  %v859_v45 = vadd.f32 %v829_v33, %v135_v29  ;;  %v1021_v15 = vadd.s32 64, %v1693_v20  ;;  %v1213_v23 = vsel %vm1197_vm8, %v1002_v6, 0.0 }
 0x14f   :  { %1342 = vpow2.f32 %v1116_v37  ;;  %875 = vst.msk [vmem:[#allocation2 + $0x50] sm:$0xff] %vm22_vm0, %v858_v7  ;;  %v736_v48 = vpop.f32.mrb[56].mxu0  ;;  %v833_v49 = vpop.f32.mrb[56].mxu1  ;;  %v1212_v10 = vsel %vm1196_vm7, %v1001_v57, 0.0  ;;  %v1022_v37 = vadd.s32 72, %v1693_v20  ;;  %v1004_v34 = vadd.f32 %v959_v36, %v892_v16 }
 0x150   :  { %1344 = vpow2.f32 %v1118_v31  ;;  %v737_v52 = vadd.f32 %v736_v48, %v1680_v32  ;;  %v738_v53 = vpop.f32.mrb[57].mxu0  ;;  %v835_v54 = vpop.f32.mrb[57].mxu1  ;;  %876 = vst.msk [vmem:[#allocation2 + $0x58] sm:$0xff] %vm22_vm0, %v859_v45  ;;  %v1232_v19 = vsel %vm22_vm0, %v1212_v10, 0.0  ;;  %v1234_v42 = vsel %vm22_vm0, %v1213_v23, 0.0  ;;  %v893_v48 = vld [vmem:[#allocation2 + $0x48] sm:$0xff] }
 0x151   :  { %v739_v56 = vpop.f32.mrb[58].mxu0  ;;  %v836_v63 = vpop.f32.mrb[58].mxu1  ;;  %v1233_v40 = vadd.f32 %v1232_v19, %v1231_v14  ;;  %vm1199_vm10 = vcmp.eq.s32.totalorder %v1021_v15, %v1730_v43  ;;  %v1023_v57 = vadd.s32 80, %v1693_v20  ;;  %vm1200_vm11 = vcmp.eq.s32.totalorder %v1022_v37, %v1730_v43 }
 0x152   :  { %v740_v32 = vadd.f32 %v739_v56, %v1682_v38  ;;  %v834_v0 = vadd.f32 %v833_v49, %v737_v52  ;;  %v741_v1 = vpop.f32.mrb[59].mxu0  ;;  %v838_v3 = vpop.f32.mrb[59].mxu1  ;;  %v139_v49 = vld [vmem:[#allocation2 + $0x78] sm:$0xff]  ;;  %v1215_v56 = vsel %vm1199_vm10, %v1004_v34, 0.0  ;;  %v1025_v10 = vadd.s32 96, %v1693_v20 }
 0x153   :  { %v954_v11 = vpop.permute.xlu1 %953  ;;  %v1235_v59 = vadd.f32 %v1234_v42, %v1233_v40  ;;  %v1238_v3 = vsel %vm22_vm0, %v1215_v56, 0.0  ;;  %vm1201_vm12 = vcmp.eq.s32.totalorder %v1023_v57, %v1730_v43 }
 0x154   :  { %v860_v61 = vadd.f32 %v834_v0, %v136_v62  ;;  %v837_v8 = vadd.f32 %v836_v63, %v740_v32  ;;  %v1003_v21 = vadd.f32 %v954_v11, %v891_v13  ;;  %v969_v63 = vpop.permute.xlu0 %968  ;;  %vm1203_vm14 = vcmp.eq.s32.totalorder %v1025_v10, %v1730_v43 }
 0x156   :  { %877 = vst.msk [vmem:[#allocation2 + $0x60] sm:$0xff] %vm22_vm0, %v860_v61  ;;  %v861_v38 = vadd.f32 %v837_v8, %v137_v4  ;;  %v1214_v53 = vsel %vm1198_vm9, %v1003_v21, 0.0  ;;  %v894_v12 = vld [vmem:[#allocation2 + $0x50] sm:$0xff]  ;;  %v1024_v4 = vadd.s32 88, %v1693_v20 }
 0x157   :  { %v744_v22 = vpop.f32.mrb[60].mxu0  ;;  %v841_v18 = vpop.f32.mrb[60].mxu1  ;;  %v1236_v32 = vsel %vm22_vm0, %v1214_v53, 0.0  ;;  %v1006_v0 = vadd.f32 %v969_v63, %v894_v12  ;;  %v895_v6 = vld [vmem:[#allocation2 + $0x58] sm:$0xff] }
 0x158   :  { %v1341_v41 = vpop.eup %1340  ;;  %878 = vst.msk [vmem:[#allocation2 + $0x68] sm:$0xff] %vm22_vm0, %v861_v38  ;;  %v745_v24 = vadd.f32 %v744_v22, %v1684_v44  ;;  %v746_v25 = vpop.f32.mrb[61].mxu0  ;;  %v1237_v61 = vadd.f32 %v1236_v32, %v1235_v59  ;;  %vm1202_vm13 = vcmp.eq.s32.totalorder %v1024_v4, %v1730_v43 }
 0x159   :  { %v843_v26 = vpop.f32.mrb[61].mxu1  ;;  %v1343_v29 = vpop.eup %1342  ;;  %v1146_v30 = vsel %vm22_vm0, %v1341_v41, 0.0  ;;  %v1217_v36 = vsel %vm1201_vm12, %v1006_v0, 0.0  ;;  %v1026_v41 = vadd.s32 104, %v1693_v20  ;;  %v1027_v25 = vadd.s32 112, %v1693_v20 }
 0x15a   :  { %v747_v31 = vpop.f32.mrb[62].mxu0  ;;  %v844_v2 = vpop.f32.mrb[62].mxu1  ;;  %v1147_v33 = vsel %vm22_vm0, %v1343_v29, 0.0  ;;  %v842_v51 = vadd.f32 %v841_v18, %v745_v24  ;;  %v1239_v11 = vadd.f32 %v1238_v3, %v1237_v61  ;;  %v1242_v18 = vsel %vm22_vm0, %v1217_v36, 0.0 }
 0x15b   :  { %v1345_v7 = vpop.eup %1344  ;;  %v748_v35 = vadd.f32 %v747_v31, %v1686_v50  ;;  %v749_v44 = vpop.f32.mrb[63].mxu0  ;;  %v1148_v39 = vadd.f32 %v1147_v33, %v1146_v30  ;;  %vm1204_vm15 = vcmp.eq.s32.totalorder %v1026_v41, %v1730_v43  ;;  %vm1205_vm1 = vcmp.eq.s32.totalorder %v1027_v25, %v1730_v43 }
 0x15c   :  { %v846_v27 = vpop.f32.mrb[63].mxu1  ;;  %v964_v45 = vpop.permute.xlu1 %963  ;;  %v1790_v52 = vsel %vm22_vm0, %v1345_v7, 0.0  ;;  %v862_v54 = vadd.f32 %v842_v51, %v138_v58 }
 0x15d   :  { %v845_v50 = vadd.f32 %v844_v2, %v748_v35  ;;  %v1150_v55 = vadd.f32 %v1790_v52, %v1148_v39  ;;  %v1005_v60 = vadd.f32 %v964_v45, %v893_v48  ;;  %v896_v47 = vld [vmem:[#allocation2 + $0x60] sm:$0xff]  ;;  %v979_v38 = vpop.permute.xlu0 %978  ;;  %v1028_v35 = vadd.s32 120, %v1693_v20 }
 0x15e   :  { %879 = vst.msk [vmem:[#allocation2 + $0x70] sm:$0xff] %vm22_vm0, %v862_v54  ;;  %v1008_v16 = vadd.f32 %v979_v38, %v896_v47 }
 0x15f   :  { %v863_v62 = vadd.f32 %v845_v50, %v139_v49  ;;  %v1152_v17 = vadd.f32 %v1150_v55, %v1790_v52  ;;  %v1216_v8 = vsel %vm1200_vm11, %v1005_v60, 0.0  ;;  %v897_v21 = vld [vmem:[#allocation2 + $0x68] sm:$0xff]  ;;  %vm1206_vm2 = vcmp.eq.s32.totalorder %v1028_v35, %v1730_v43 }
 0x160   :  { %v974_v5 = vpop.permute.xlu1 %973  ;;  %v1240_v15 = vsel %vm22_vm0, %v1216_v8, 0.0  ;;  %v1219_v31 = vsel %vm1203_vm14, %v1008_v16, 0.0 }
 0x161   :  { %880 = vst.msk [vmem:[#allocation2 + $0x78] sm:$0xff] %vm22_vm0, %v863_v62  ;;  %v1154_v1 = vadd.f32 %v1152_v17, %v1790_v52  ;;  %v1007_v13 = vadd.f32 %v974_v5, %v895_v6  ;;  %v1241_v23 = vadd.f32 %v1240_v15, %v1239_v11  ;;  %v989_v58 = vpop.permute.xlu0 %988  ;;  %v1246_v34 = vsel %vm22_vm0, %v1219_v31, 0.0 }
 0x163   :  { %v1156_v9 = vadd.f32 %v1154_v1, %v1790_v52  ;;  %v1218_v24 = vsel %vm1202_vm13, %v1007_v13, 0.0  ;;  %v1243_v30 = vadd.f32 %v1242_v18, %v1241_v23 }
 0x164   :  { %v984_v19 = vpop.permute.xlu1 %983  ;;  %v1244_v2 = vsel %vm22_vm0, %v1218_v24, 0.0 }
 0x165   :  { %v1158_v14 = vadd.f32 %v1156_v9, %v1790_v52  ;;  %v898_v26 = vld [vmem:[#allocation2 + $0x70] sm:$0xff]  ;;  %v1009_v37 = vadd.f32 %v984_v19, %v897_v21  ;;  %v1245_v27 = vadd.f32 %v1244_v2, %v1243_v30 }
 0x166   :  { %v1010_v33 = vadd.f32 %v989_v58, %v898_v26 }
 0x167   :  { %v1160_v22 = vadd.f32 %v1158_v14, %v1790_v52  ;;  %v1220_v39 = vsel %vm1204_vm15, %v1009_v37, 0.0  ;;  %v1247_v45 = vadd.f32 %v1246_v34, %v1245_v27 }
 0x168   :  { %v899_v51 = vld [vmem:[#allocation2 + $0x78] sm:$0xff]  ;;  %v994_v40 = vpop.permute.xlu1 %993  ;;  %v1221_v49 = vsel %vm1205_vm1, %v1010_v33, 0.0  ;;  %v1248_v53 = vsel %vm22_vm0, %v1220_v39, 0.0 }
 0x169   :  { %v1162_v29 = vadd.f32 %v1160_v22, %v1790_v52  ;;  %v1011_v48 = vadd.f32 %v994_v40, %v899_v51  ;;  %v1250_v50 = vsel %vm22_vm0, %v1221_v49, 0.0  ;;  %v1249_v55 = vadd.f32 %v1248_v53, %v1247_v45 }
 0x16b   :  { %v1164_v7 = vadd.f32 %v1162_v29, %v1790_v52  ;;  %v1222_v57 = vsel %vm1206_vm2, %v1011_v48, 0.0  ;;  %v1251_v59 = vadd.f32 %v1250_v50, %v1249_v55 }
 0x16c   :  { %v1252_v56 = vsel %vm22_vm0, %v1222_v57, 0.0  ;;  %vm1260_vm0 = vcmp.ge.s32.totalorder %v1724_v46, 0 }
 0x16d   :  { %v1166_v44 = vadd.f32 %v1164_v7, %v1790_v52  ;;  %v1253_v63 = vadd.f32 %v1252_v56, %v1251_v59 }
 0x16f   :  { %v1168_v42 = vadd.f32 %v1166_v44, %v1790_v52  ;;  %v1254_v43 = vrot.slane %v1253_v63, 4 }
 0x171   :  { %v1170_v54 = vadd.f32 %v1168_v42, %v1790_v52  ;;  %v1255_v3 = vadd.f32 %v1254_v43, %v1253_v63 }
 0x173   :  { %v1172_v20 = vadd.f32 %v1170_v54, %v1790_v52  ;;  %v1256_v5 = vrot.slane %v1255_v3, 2 }
 0x175   :  { %v1174_v12 = vadd.f32 %v1172_v20, %v1790_v52  ;;  %v1257_v6 = vadd.f32 %v1256_v5, %v1255_v3 }
 0x177   :  { %v1176_v60 = vadd.f32 %v1174_v12, %v1790_v52  ;;  %v1258_v61 = vrot.slane %v1257_v6, 1 }
 0x179   :  { %v1177_v62 = vrot.slane %v1176_v60, 4  ;;  %v1259_v52 = vadd.f32 %v1258_v61, %v1257_v6 }
 0x17b   :  { %v1178_v17 = vadd.f32 %v1177_v62, %v1176_v60 }
 0x17d   :  { %v1179_v32 = vrot.slane %v1178_v17, 2 }
 0x17f   :  { %v1180_v0 = vadd.f32 %v1179_v32, %v1178_v17 }
 0x181   :  { %v1181_v1 = vrot.slane %v1180_v0, 1 }
 0x183   :  { %v1182_v4 = vadd.f32 %v1181_v1, %v1180_v0 }
 0x185   :  { %1346 = vlog2.f32 %v1182_v4 }
 0x18f   :  { %v1347_v8 = vpop.eup %1346 }
 0x190   :  { %v1184_v9 = vmul.f32 0.6931472, %v1347_v8 }
 0x192   :  { %v1185_v10 = vadd.f32 %v1184_v9, %v1741_v28 }
 0x194   :  { %v1261_v47 = vsub.f32 %v1185_v10, %v1259_v52 }
 0x196   :  { %v1262_v11 = vsel %vm1260_vm0, %v1261_v47, 0.0 }
 0x197   :  { %1264 = vst.msk [vmem:[%s1841_s4] sm:$0x1] %vm1263_vm3, %v1262_v11 }

</bundles_post_ra>
